<compile_context>
chip_gen: v6e
topology: v6e:2x2x1
jax: 0.10.0
libtpu: 0.0.40
codegen_flags: <defaults>
</compile_context>

<pallas_src>
import functools

import jax
import jax.numpy as jnp
from jax.experimental import pallas as pl
from jax.experimental.pallas import tpu as pltpu

SIGMA = 1.0
IS_RELATIVE_DETACH = True   # detach() only affects gradients; forward identical

_LANE_CHOICES = (1024, 512, 256, 128)
_TARGET_BLOCK_ELEMS = 256 * 1024          # ~1 MiB of f32 per block


def _erfinv(t):
    """Giles (2010) single-precision approximation of erfinv(t), |t| < 1."""
    w = -jnp.log((1.0 - t) * (1.0 + t))
    # central branch (w < 5, i.e. |t| <~ 0.9984)
    wa = w - 2.5
    pa = jnp.float32(2.81022636e-08)
    for c in (3.43273939e-07, -3.5233877e-06, -4.39150654e-06, 2.1858087e-04,
              -1.25372503e-03, -4.17768164e-03, 2.46640727e-01, 1.50140941e+00):
        pa = pa * wa + jnp.float32(c)
    # tail branch (w >= 5)
    wb = jnp.sqrt(w) - 3.0
    pb = jnp.float32(-2.00214257e-04)
    for c in (1.00950558e-04, 1.34934322e-03, -3.67342844e-03, 5.73950773e-03,
              -7.62246130e-03, 9.43887047e-03, 1.00167406e+00, 2.83297682e+00):
        pb = pb * wb + jnp.float32(c)
    return jnp.where(w < 5.0, pa, pb) * t


def _hash32(h):
    """Mueller/degski 32-bit integer hash (int32, wrapping arithmetic).

    Logical right shifts are emulated with arithmetic shift + mask so the
    whole hash stays in plain int32 VPU ops (also interpret-safe).
    """
    h = (h ^ ((h >> 16) & 0xFFFF)) * jnp.int32(0x045D9F3B)
    h = (h ^ ((h >> 16) & 0xFFFF)) * jnp.int32(0x045D9F3B)
    h = h ^ ((h >> 16) & 0xFFFF)
    return h


def _gaussian_noise_kernel(seed_ref, x_ref, o_ref, *, sigma):
    x = x_ref[...]
    rows, lanes = x.shape                        # static block shape

    # Global linear element index of every element in this tile.
    row = jax.lax.broadcasted_iota(jnp.int32, x.shape, 0)
    col = jax.lax.broadcasted_iota(jnp.int32, x.shape, 1)
    idx = (pl.program_id(0) * rows + row) * lanes + col

    # Seed premix (LCG step) + counter hash -> per-element 32-bit noise.
    seed = seed_ref[0]
    h = _hash32(idx ^ (seed * jnp.int32(1103515245) + jnp.int32(12345)))

    # 23-bit uniform in (0, 1), then inverse normal CDF -> standard normal.
    u = ((h & 0x7FFFFF).astype(jnp.float32) + 0.5) * jnp.float32(1.0 / 8388608.0)
    z = jnp.float32(1.4142135623730951) * _erfinv(2.0 * u - 1.0)

    scale = jnp.float32(sigma) * x               # is_relative_detach: same fwd value
    o_ref[...] = (x + z * scale).astype(o_ref.dtype)


def gaussian_noise(x, seed, *, sigma=SIGMA, training=True):
    """Forward pass of GaussianNoise for an arbitrary-shaped float tensor."""
    if (not training) or sigma == 0:
        return x

    orig_shape, orig_dtype = x.shape, x.dtype
    total = x.size

    # Widest lane count dividing the flat size (lane-dense output slab).
    lanes = 128
    for cand in _LANE_CHOICES:
        if total % cand == 0:
            lanes = cand
            break

    x_flat = jnp.reshape(x, (-1,)).astype(jnp.float32)
    padded = total
    if total % lanes != 0:                       # rare: tiny remainder pad only
        padded = pl.cdiv(total, lanes) * lanes
        x_flat = jnp.pad(x_flat, (0, padded - total))
    rows = padded // lanes
    x2d = jnp.reshape(x_flat, (rows, lanes))

    # ~1 MiB f32 per block; multiple of 8 sublanes; partial last block is OK.
    target_rows = max(8, _TARGET_BLOCK_ELEMS // lanes)
    if rows <= target_rows:
        tile_rows = rows                         # single block == full array dims
    else:
        tile_rows = (target_rows // 8) * 8
    grid = (pl.cdiv(rows, tile_rows),)

    seed_arr = jnp.asarray([seed], dtype=jnp.int32)

    out2d = pl.pallas_call(
        functools.partial(_gaussian_noise_kernel, sigma=float(sigma)),
        out_shape=jax.ShapeDtypeStruct((rows, lanes), jnp.float32),
        grid_spec=pltpu.PrefetchScalarGridSpec(
            num_scalar_prefetch=1,
            grid=grid,
            in_specs=[pl.BlockSpec((tile_rows, lanes), lambda i, seed: (i, 0))],
            out_specs=pl.BlockSpec((tile_rows, lanes), lambda i, seed: (i, 0)),
        ),
        compiler_params=pltpu.CompilerParams(
            dimension_semantics=("parallel",),   # tiles independent (counter RNG)
            vmem_limit_bytes=32 * 1024 * 1024,
        ),
    )(seed_arr, x2d)

    out_flat = jnp.reshape(out2d, (-1,))
    if padded != total:
        out_flat = out_flat[:total]
    return jnp.reshape(out_flat, orig_shape).astype(orig_dtype)


if __name__ == "__main__":
    key = jax.random.PRNGKey(0)
    x = jax.random.normal(key, (2, 4, 16, 16), dtype=jnp.float32)

    out = gaussian_noise(x, seed=1234, sigma=SIGMA, training=True)
    out = jax.block_until_ready(out)

    assert out.shape == x.shape and out.dtype == x.dtype

    # Sanity: out = x * (1 + sigma * z); where |x| isn't tiny the recovered
    # noise should look roughly standard-normal (mean ~0, std ~1).
    mask = jnp.abs(x) > 1e-3
    ne = jnp.where(mask, (out - x) / (SIGMA * x), 0.0)
    n = jnp.maximum(jnp.sum(mask), 1)
    m = jnp.sum(ne) / n
    s = jnp.sqrt(jnp.sum(jnp.where(mask, (ne - m) ** 2, 0.0)) / n)
    m, s = float(m), float(s)
    assert abs(m) < 0.2 and 0.7 < s < 1.3, (m, s)

    # Eval mode (or sigma == 0) is the identity.
    out_eval = jax.block_until_ready(gaussian_noise(x, seed=1234, training=False))
    assert bool(jnp.all(out_eval == x))

    print("KERNEL_OK")
</pallas_src>

<mosaic_0001>
module attributes {stable_mosaic.version = 11 : i64} {
  func.func @_gaussian_noise_kernel(%arg0: i32, %arg1: memref<1xi32, #tpu.memory_space<smem>>, %arg2: memref<2x1024xf32, #tpu.memory_space<vmem>>, %arg3: memref<2x1024xf32, #tpu.memory_space<vmem>>) attributes {dimension_semantics = [#tpu.dimension_semantics<parallel>], iteration_bounds = array<i64: 1>, scalar_prefetch = 1 : i64, scratch_operands = 0 : i64, tpu.core_type = #tpu.core_type<tc>, window_params = [{transform_indices = @transform_0, window_bounds = array<i64: 2, 1024>}, {transform_indices = @transform_1, window_bounds = array<i64: 2, 1024>}]} {
    %c0 = arith.constant 0 : index
    %c0_0 = arith.constant 0 : index
    %0 = vector.load %arg2[%c0, %c0_0] : memref<2x1024xf32, #tpu.memory_space<vmem>>, vector<2x1024xf32>
    %1 = tpu.iota {dimensions = array<i32: 0>} : vector<2x1024xi32>
    %2 = tpu.iota {dimensions = array<i32: 1>} : vector<2x1024xi32>
    %c2_i32 = arith.constant 2 : i32
    %3 = arith.muli %arg0, %c2_i32 : i32
    %4 = vector.broadcast %3 : i32 to vector<2x1024xi32>
    %5 = arith.addi %4, %1 : vector<2x1024xi32>
    %c1024_i32 = arith.constant 1024 : i32
    %6 = vector.broadcast %c1024_i32 : i32 to vector<2x1024xi32>
    %7 = arith.muli %5, %6 : vector<2x1024xi32>
    %8 = arith.addi %7, %2 : vector<2x1024xi32>
    %c0_1 = arith.constant 0 : index
    %9 = memref.load %arg1[%c0_1] : memref<1xi32, #tpu.memory_space<smem>>
    %c1103515245_i32 = arith.constant 1103515245 : i32
    %10 = arith.muli %9, %c1103515245_i32 : i32
    %c12345_i32 = arith.constant 12345 : i32
    %11 = arith.addi %10, %c12345_i32 : i32
    %12 = vector.broadcast %11 : i32 to vector<2x1024xi32>
    %13 = arith.xori %8, %12 : vector<2x1024xi32>
    %c16_i32 = arith.constant 16 : i32
    %14 = vector.broadcast %c16_i32 : i32 to vector<2x1024xi32>
    %15 = arith.shrsi %13, %14 : vector<2x1024xi32>
    %c65535_i32 = arith.constant 65535 : i32
    %16 = vector.broadcast %c65535_i32 : i32 to vector<2x1024xi32>
    %17 = arith.andi %15, %16 : vector<2x1024xi32>
    %18 = arith.xori %13, %17 : vector<2x1024xi32>
    %c73244475_i32 = arith.constant 73244475 : i32
    %19 = vector.broadcast %c73244475_i32 : i32 to vector<2x1024xi32>
    %20 = arith.muli %18, %19 : vector<2x1024xi32>
    %c16_i32_2 = arith.constant 16 : i32
    %21 = vector.broadcast %c16_i32_2 : i32 to vector<2x1024xi32>
    %22 = arith.shrsi %20, %21 : vector<2x1024xi32>
    %c65535_i32_3 = arith.constant 65535 : i32
    %23 = vector.broadcast %c65535_i32_3 : i32 to vector<2x1024xi32>
    %24 = arith.andi %22, %23 : vector<2x1024xi32>
    %25 = arith.xori %20, %24 : vector<2x1024xi32>
    %c73244475_i32_4 = arith.constant 73244475 : i32
    %26 = vector.broadcast %c73244475_i32_4 : i32 to vector<2x1024xi32>
    %27 = arith.muli %25, %26 : vector<2x1024xi32>
    %c16_i32_5 = arith.constant 16 : i32
    %28 = vector.broadcast %c16_i32_5 : i32 to vector<2x1024xi32>
    %29 = arith.shrsi %27, %28 : vector<2x1024xi32>
    %c65535_i32_6 = arith.constant 65535 : i32
    %30 = vector.broadcast %c65535_i32_6 : i32 to vector<2x1024xi32>
    %31 = arith.andi %29, %30 : vector<2x1024xi32>
    %32 = arith.xori %27, %31 : vector<2x1024xi32>
    %c8388607_i32 = arith.constant 8388607 : i32
    %33 = vector.broadcast %c8388607_i32 : i32 to vector<2x1024xi32>
    %34 = arith.andi %32, %33 : vector<2x1024xi32>
    %35 = arith.sitofp %34 : vector<2x1024xi32> to vector<2x1024xf32>
    %cst = arith.constant 5.000000e-01 : f32
    %36 = vector.broadcast %cst : f32 to vector<2x1024xf32>
    %37 = arith.addf %35, %36 : vector<2x1024xf32>
    %cst_7 = arith.constant 1.1920929E-7 : f32
    %38 = vector.broadcast %cst_7 : f32 to vector<2x1024xf32>
    %39 = arith.mulf %37, %38 : vector<2x1024xf32>
    %cst_8 = arith.constant 2.000000e+00 : f32
    %40 = vector.broadcast %cst_8 : f32 to vector<2x1024xf32>
    %41 = arith.mulf %40, %39 : vector<2x1024xf32>
    %cst_9 = arith.constant 1.000000e+00 : f32
    %42 = vector.broadcast %cst_9 : f32 to vector<2x1024xf32>
    %43 = arith.subf %41, %42 : vector<2x1024xf32>
    %cst_10 = arith.constant 1.000000e+00 : f32
    %44 = vector.broadcast %cst_10 : f32 to vector<2x1024xf32>
    %45 = arith.subf %44, %43 : vector<2x1024xf32>
    %cst_11 = arith.constant 1.000000e+00 : f32
    %46 = vector.broadcast %cst_11 : f32 to vector<2x1024xf32>
    %47 = arith.addf %46, %43 : vector<2x1024xf32>
    %48 = arith.mulf %45, %47 : vector<2x1024xf32>
    %49 = math.log %48 : vector<2x1024xf32>
    %cst_12 = arith.constant 0.000000e+00 : f32
    %50 = vector.broadcast %cst_12 : f32 to vector<2x1024xf32>
    %51 = arith.subf %50, %49 : vector<2x1024xf32>
    %cst_13 = arith.constant 2.500000e+00 : f32
    %52 = vector.broadcast %cst_13 : f32 to vector<2x1024xf32>
    %53 = arith.subf %51, %52 : vector<2x1024xf32>
    %cst_14 = arith.constant 2.81022636E-8 : f32
    %54 = vector.broadcast %cst_14 : f32 to vector<2x1024xf32>
    %55 = arith.mulf %54, %53 : vector<2x1024xf32>
    %cst_15 = arith.constant 3.43273939E-7 : f32
    %56 = vector.broadcast %cst_15 : f32 to vector<2x1024xf32>
    %57 = arith.addf %55, %56 : vector<2x1024xf32>
    %58 = arith.mulf %57, %53 : vector<2x1024xf32>
    %cst_16 = arith.constant -3.5233877E-6 : f32
    %59 = vector.broadcast %cst_16 : f32 to vector<2x1024xf32>
    %60 = arith.addf %58, %59 : vector<2x1024xf32>
    %61 = arith.mulf %60, %53 : vector<2x1024xf32>
    %cst_17 = arith.constant -4.39150654E-6 : f32
    %62 = vector.broadcast %cst_17 : f32 to vector<2x1024xf32>
    %63 = arith.addf %61, %62 : vector<2x1024xf32>
    %64 = arith.mulf %63, %53 : vector<2x1024xf32>
    %cst_18 = arith.constant 2.1858087E-4 : f32
    %65 = vector.broadcast %cst_18 : f32 to vector<2x1024xf32>
    %66 = arith.addf %64, %65 : vector<2x1024xf32>
    %67 = arith.mulf %66, %53 : vector<2x1024xf32>
    %cst_19 = arith.constant -0.00125372503 : f32
    %68 = vector.broadcast %cst_19 : f32 to vector<2x1024xf32>
    %69 = arith.addf %67, %68 : vector<2x1024xf32>
    %70 = arith.mulf %69, %53 : vector<2x1024xf32>
    %cst_20 = arith.constant -0.00417768164 : f32
    %71 = vector.broadcast %cst_20 : f32 to vector<2x1024xf32>
    %72 = arith.addf %70, %71 : vector<2x1024xf32>
    %73 = arith.mulf %72, %53 : vector<2x1024xf32>
    %cst_21 = arith.constant 0.246640727 : f32
    %74 = vector.broadcast %cst_21 : f32 to vector<2x1024xf32>
    %75 = arith.addf %73, %74 : vector<2x1024xf32>
    %76 = arith.mulf %75, %53 : vector<2x1024xf32>
    %cst_22 = arith.constant 1.50140941 : f32
    %77 = vector.broadcast %cst_22 : f32 to vector<2x1024xf32>
    %78 = arith.addf %76, %77 : vector<2x1024xf32>
    %79 = math.sqrt %51 : vector<2x1024xf32>
    %cst_23 = arith.constant 3.000000e+00 : f32
    %80 = vector.broadcast %cst_23 : f32 to vector<2x1024xf32>
    %81 = arith.subf %79, %80 : vector<2x1024xf32>
    %cst_24 = arith.constant -2.00214257E-4 : f32
    %82 = vector.broadcast %cst_24 : f32 to vector<2x1024xf32>
    %83 = arith.mulf %82, %81 : vector<2x1024xf32>
    %cst_25 = arith.constant 1.00950558E-4 : f32
    %84 = vector.broadcast %cst_25 : f32 to vector<2x1024xf32>
    %85 = arith.addf %83, %84 : vector<2x1024xf32>
    %86 = arith.mulf %85, %81 : vector<2x1024xf32>
    %cst_26 = arith.constant 0.00134934322 : f32
    %87 = vector.broadcast %cst_26 : f32 to vector<2x1024xf32>
    %88 = arith.addf %86, %87 : vector<2x1024xf32>
    %89 = arith.mulf %88, %81 : vector<2x1024xf32>
    %cst_27 = arith.constant -0.00367342844 : f32
    %90 = vector.broadcast %cst_27 : f32 to vector<2x1024xf32>
    %91 = arith.addf %89, %90 : vector<2x1024xf32>
    %92 = arith.mulf %91, %81 : vector<2x1024xf32>
    %cst_28 = arith.constant 0.00573950773 : f32
    %93 = vector.broadcast %cst_28 : f32 to vector<2x1024xf32>
    %94 = arith.addf %92, %93 : vector<2x1024xf32>
    %95 = arith.mulf %94, %81 : vector<2x1024xf32>
    %cst_29 = arith.constant -0.0076224613 : f32
    %96 = vector.broadcast %cst_29 : f32 to vector<2x1024xf32>
    %97 = arith.addf %95, %96 : vector<2x1024xf32>
    %98 = arith.mulf %97, %81 : vector<2x1024xf32>
    %cst_30 = arith.constant 0.00943887047 : f32
    %99 = vector.broadcast %cst_30 : f32 to vector<2x1024xf32>
    %100 = arith.addf %98, %99 : vector<2x1024xf32>
    %101 = arith.mulf %100, %81 : vector<2x1024xf32>
    %cst_31 = arith.constant 1.00167406 : f32
    %102 = vector.broadcast %cst_31 : f32 to vector<2x1024xf32>
    %103 = arith.addf %101, %102 : vector<2x1024xf32>
    %104 = arith.mulf %103, %81 : vector<2x1024xf32>
    %cst_32 = arith.constant 2.83297682 : f32
    %105 = vector.broadcast %cst_32 : f32 to vector<2x1024xf32>
    %106 = arith.addf %104, %105 : vector<2x1024xf32>
    %cst_33 = arith.constant 5.000000e+00 : f32
    %107 = vector.broadcast %cst_33 : f32 to vector<2x1024xf32>
    %108 = arith.cmpf olt, %51, %107 : vector<2x1024xf32>
    %109 = arith.select %108, %78, %106 : vector<2x1024xi1>, vector<2x1024xf32>
    %110 = arith.mulf %109, %43 : vector<2x1024xf32>
    %cst_34 = arith.constant 1.41421354 : f32
    %111 = vector.broadcast %cst_34 : f32 to vector<2x1024xf32>
    %112 = arith.mulf %111, %110 : vector<2x1024xf32>
    %cst_35 = arith.constant 1.000000e+00 : f32
    %113 = vector.broadcast %cst_35 : f32 to vector<2x1024xf32>
    %114 = arith.mulf %113, %0 : vector<2x1024xf32>
    %115 = arith.mulf %112, %114 : vector<2x1024xf32>
    %116 = arith.addf %0, %115 : vector<2x1024xf32>
    %c0_36 = arith.constant 0 : index
    %c0_37 = arith.constant 0 : index
    %117 = vector.load %arg3[%c0_36, %c0_37] : memref<2x1024xf32, #tpu.memory_space<vmem>>, vector<2x1024xf32>
    tpu.vector_store %arg3[%c0_36, %c0_37], %116 {strides = array<i32>} : memref<2x1024xf32, #tpu.memory_space<vmem>>, vector<2x1024xf32>,
    return
  }
  func.func @transform_0(%arg0: i32, %arg1: memref<1xi32, #tpu.memory_space<smem>>) -> (i32, i32) {
    %c0_i32 = arith.constant 0 : i32
    %c0_i32_0 = arith.constant 0 : i32
    return %arg0, %c0_i32 : i32, i32
  }
  func.func @transform_1(%arg0: i32, %arg1: memref<1xi32, #tpu.memory_space<smem>>) -> (i32, i32) {
    %c0_i32 = arith.constant 0 : i32
    %c0_i32_0 = arith.constant 0 : i32
    return %arg0, %c0_i32 : i32, i32
  }
}

</mosaic_0001>

<bundles_post_ra>
// kernel: tpu_custom_call.1
= control target key start
LH: loop header
LB: loop body
LE: loop exit
PB: predicated region body
PF: predicated region fallthrough
CT: control target
= control target key end

     0   :  { %8 = vsyncpa [#allocation5], 0  ;;  %s1284_s0 = inlined_call_operand.<no memory space> [shape: s32[1], index: 0, kind: input, shape index: {}]   ;;  %s1285_s1 = inlined_call_operand.hbm [shape: f32[2,1024], index: 1, kind: input, shape index: {}]   ;;  %s1286_s2 = inlined_call_operand.hbm [shape: f32[2,1024], index: 2, kind: output, shape index: {}]  }
   0x1   :  { %9 = vsyncpa [#allocation6], 0  ;;  %s848_s9 = smov [#allocation4]  }
   0x2   :  { %s16_s10 = sshll.u32 %s848_s9, 4  ;;  %s17_s10 = int_to_ptr.vmem [resolvable:$true] %s16_s10 }
   0x3   :  { %s812_s11 = scalar_lea.vmem %s17_s10, 256  ;;  %p817_p1 = scmp.lt.s32.totalorder %s17_s10, %s17_s10 }
   0x4   :  { %p813_p0 = scmp.ne.s32.totalorder %s17_s10, %s812_s11  ;;  %p818_p2 = scmp.lt.s32.totalorder %s812_s11, %s812_s11 }
   0x6   :  { %p819_p3 = por %p818_p2, %p817_p1 }
   0x8   :  { %p820_p4 = pnand %p819_p3, %p813_p0 }
   0xa   :  { %823 = shalt.err (!%p820_p4)
}
   0xb   :  { %19 = dma.hbm_to_vmem [thread:$0]  %s1285_s1, 256, %s17_s10, [#allocation5]  }
   0xc   :  { %844 = dma.done.wait [#allocation5], 256  }
   0xd   :  { %845 = vsyncadd [#allocation5], 4294967040  ;;  %v25_v0 = vlaneseq  ;;  %s49_s16 = smul.u32 1103515245, %s1284_s0  ;;  %s850_s0 = smov [#allocation7]  }
   0xe   :  { %s710_s1 = sshll.u32 %s850_s0, 4  ;;  %s711_s1 = int_to_ptr.vmem [resolvable:$true] %s710_s1 }
   0xf   :  { %v872_v1 = vshrl.u32 %v25_v0, 7  ;;  %v28_v2 = vand.u32 127, %v25_v0  ;;  %s50_s17 = sadd.s32 12345, %s49_s16  ;;  %s824_s18 = scalar_lea.vmem %s711_s1, 256 }
  0x10   :  { %v51_v11 = vstv %s50_s17  ;;  %p825_p5 = scmp.ne.s32.totalorder %s711_s1, %s824_s18  ;;  %p829_p6 = scmp.lt.s32.totalorder %s711_s1, %s711_s1 }
  0x11   :  { %v29_v3 = vadd.s32 128, %v28_v2  ;;  %v30_v4 = vadd.s32 256, %v28_v2  ;;  %v31_v5 = vadd.s32 384, %v28_v2  ;;  %v32_v6 = vadd.s32 512, %v28_v2  ;;  %p830_p7 = scmp.lt.s32.totalorder %s824_s18, %s824_s18 }
  0x12   :  { %v33_v7 = vadd.s32 640, %v28_v2  ;;  %v34_v8 = vadd.s32 768, %v28_v2  ;;  %v35_v9 = vadd.s32 896, %v28_v2  ;;  %v39_v10 = vmul.u32 1024, %v872_v1 }
  0x13   :  { %p831_p8 = por %p830_p7, %p829_p6 }
  0x14   :  { %v40_v12 = vadd.s32 %v39_v10, %v28_v2  ;;  %v41_v13 = vadd.s32 %v39_v10, %v29_v3  ;;  %v42_v14 = vadd.s32 %v39_v10, %v30_v4  ;;  %v43_v15 = vadd.s32 %v39_v10, %v31_v5 }
  0x15   :  { %v44_v16 = vadd.s32 %v39_v10, %v32_v6  ;;  %v45_v17 = vadd.s32 %v39_v10, %v33_v7  ;;  %v46_v18 = vadd.s32 %v39_v10, %v34_v8  ;;  %v47_v19 = vadd.s32 %v39_v10, %v35_v9  ;;  %p832_p9 = pnand %p831_p8, %p825_p5 }
  0x16   :  { %v52_v20 = vxor.u32 %v51_v11, %v40_v12  ;;  %v53_v21 = vxor.u32 %v51_v11, %v41_v13  ;;  %v54_v22 = vxor.u32 %v51_v11, %v42_v14  ;;  %v55_v23 = vxor.u32 %v51_v11, %v43_v15 }
  0x17   :  { %v56_v24 = vxor.u32 %v51_v11, %v44_v16  ;;  %v57_v25 = vxor.u32 %v51_v11, %v45_v17  ;;  %v58_v26 = vxor.u32 %v51_v11, %v46_v18  ;;  %v59_v27 = vxor.u32 %v51_v11, %v47_v19 }
  0x18   :  { %v719_v28 = vshrl.u32 %v52_v20, 16  ;;  %v720_v29 = vshrl.u32 %v53_v21, 16  ;;  %v721_v30 = vshrl.u32 %v54_v22, 16  ;;  %v722_v31 = vshrl.u32 %v55_v23, 16 }
  0x19   :  { %v723_v32 = vshrl.u32 %v56_v24, 16  ;;  %v724_v33 = vshrl.u32 %v57_v25, 16  ;;  %v725_v34 = vshrl.u32 %v58_v26, 16  ;;  %v726_v35 = vshrl.u32 %v59_v27, 16 }
  0x1a   :  { %v76_v36 = vxor.u32 %v719_v28, %v52_v20  ;;  %v77_v37 = vxor.u32 %v720_v29, %v53_v21  ;;  %v78_v38 = vxor.u32 %v721_v30, %v54_v22  ;;  %v79_v39 = vxor.u32 %v722_v31, %v55_v23 }
  0x1b   :  { %v80_v40 = vxor.u32 %v723_v32, %v56_v24  ;;  %v81_v41 = vxor.u32 %v724_v33, %v57_v25  ;;  %v82_v42 = vxor.u32 %v725_v34, %v58_v26  ;;  %v83_v43 = vxor.u32 %v726_v35, %v59_v27 }
  0x1c   :  { %v84_v44 = vmul.u32 73244475, %v76_v36  ;;  %v85_v45 = vmul.u32 73244475, %v77_v37 }
  0x1d   :  { %v86_v46 = vmul.u32 73244475, %v78_v38  ;;  %v87_v47 = vmul.u32 73244475, %v79_v39 }
  0x1e   :  { %v88_v48 = vmul.u32 73244475, %v80_v40  ;;  %v89_v49 = vmul.u32 73244475, %v81_v41  ;;  %v727_v50 = vshrl.u32 %v84_v44, 16  ;;  %v728_v51 = vshrl.u32 %v85_v45, 16 }
  0x1f   :  { %v90_v52 = vmul.u32 73244475, %v82_v42  ;;  %v91_v53 = vmul.u32 73244475, %v83_v43  ;;  %v729_v54 = vshrl.u32 %v86_v46, 16  ;;  %v730_v55 = vshrl.u32 %v87_v47, 16 }
  0x20   :  { %v731_v56 = vshrl.u32 %v88_v48, 16  ;;  %v732_v57 = vshrl.u32 %v89_v49, 16  ;;  %v108_v58 = vxor.u32 %v727_v50, %v84_v44  ;;  %v109_v59 = vxor.u32 %v728_v51, %v85_v45 }
  0x21   :  { %v733_v60 = vshrl.u32 %v90_v52, 16  ;;  %v734_v61 = vshrl.u32 %v91_v53, 16  ;;  %v110_v62 = vxor.u32 %v729_v54, %v86_v46  ;;  %v111_v63 = vxor.u32 %v730_v55, %v87_v47 }
  0x22   :  { %v112_v0 = vxor.u32 %v731_v56, %v88_v48  ;;  %v113_v2 = vxor.u32 %v732_v57, %v89_v49  ;;  %v116_v3 = vmul.u32 73244475, %v108_v58  ;;  %v117_v4 = vmul.u32 73244475, %v109_v59 }
  0x23   :  { %v114_v5 = vxor.u32 %v733_v60, %v90_v52  ;;  %v115_v6 = vxor.u32 %v734_v61, %v91_v53  ;;  %v118_v7 = vmul.u32 73244475, %v110_v62  ;;  %v119_v8 = vmul.u32 73244475, %v111_v63 }
  0x24   :  { %v120_v9 = vmul.u32 73244475, %v112_v0  ;;  %v121_v10 = vmul.u32 73244475, %v113_v2  ;;  %v735_v11 = vshrl.u32 %v116_v3, 16  ;;  %v736_v12 = vshrl.u32 %v117_v4, 16 }
  0x25   :  { %v122_v13 = vmul.u32 73244475, %v114_v5  ;;  %v123_v14 = vmul.u32 73244475, %v115_v6  ;;  %v737_v15 = vshrl.u32 %v118_v7, 16  ;;  %v738_v16 = vshrl.u32 %v119_v8, 16 }
  0x26   :  { %v739_v17 = vshrl.u32 %v120_v9, 16  ;;  %v740_v18 = vshrl.u32 %v121_v10, 16  ;;  %v140_v19 = vxor.u32 %v735_v11, %v116_v3  ;;  %v141_v20 = vxor.u32 %v736_v12, %v117_v4 }
  0x27   :  { %v741_v21 = vshrl.u32 %v122_v13, 16  ;;  %v742_v22 = vshrl.u32 %v123_v14, 16  ;;  %v142_v23 = vxor.u32 %v737_v15, %v118_v7  ;;  %v143_v24 = vxor.u32 %v738_v16, %v119_v8 }
  0x28   :  { %v144_v25 = vxor.u32 %v739_v17, %v120_v9  ;;  %v145_v26 = vxor.u32 %v740_v18, %v121_v10  ;;  %v148_v27 = vand.u32 8388607, %v140_v19  ;;  %v149_v28 = vand.u32 8388607, %v141_v20 }
  0x29   :  { %v146_v29 = vxor.u32 %v741_v21, %v122_v13  ;;  %v147_v30 = vxor.u32 %v742_v22, %v123_v14  ;;  %v150_v31 = vand.u32 8388607, %v142_v23  ;;  %v151_v32 = vand.u32 8388607, %v143_v24 }
  0x2a   :  { %v152_v33 = vand.u32 8388607, %v144_v25  ;;  %v153_v34 = vand.u32 8388607, %v145_v26  ;;  %v156_v35 = vcvt.s32.f32 %v148_v27  ;;  %v157_v36 = vcvt.s32.f32 %v149_v28 }
  0x2b   :  { %v154_v37 = vand.u32 8388607, %v146_v29  ;;  %v155_v38 = vand.u32 8388607, %v147_v30  ;;  %v158_v39 = vcvt.s32.f32 %v150_v31  ;;  %v159_v40 = vcvt.s32.f32 %v151_v32 }
  0x2c   :  { %v160_v41 = vcvt.s32.f32 %v152_v33  ;;  %v161_v42 = vcvt.s32.f32 %v153_v34  ;;  %v164_v43 = vadd.f32 0.5, %v156_v35  ;;  %v165_v44 = vadd.f32 0.5, %v157_v36 }
  0x2d   :  { %v162_v45 = vcvt.s32.f32 %v154_v37  ;;  %v163_v46 = vcvt.s32.f32 %v155_v38  ;;  %v166_v47 = vadd.f32 0.5, %v158_v39  ;;  %v167_v48 = vadd.f32 0.5, %v159_v40 }
  0x2e   :  { %v168_v49 = vadd.f32 0.5, %v160_v41  ;;  %v169_v50 = vadd.f32 0.5, %v161_v42  ;;  %v172_v51 = vmul.f32 1.1920929e-07, %v164_v43  ;;  %v173_v52 = vmul.f32 1.1920929e-07, %v165_v44 }
  0x2f   :  { %v170_v53 = vadd.f32 0.5, %v162_v45  ;;  %v171_v54 = vadd.f32 0.5, %v163_v46  ;;  %v174_v55 = vmul.f32 1.1920929e-07, %v166_v47  ;;  %v175_v56 = vmul.f32 1.1920929e-07, %v167_v48 }
  0x30   :  { %v176_v57 = vmul.f32 1.1920929e-07, %v168_v49  ;;  %v177_v58 = vmul.f32 1.1920929e-07, %v169_v50  ;;  %v180_v59 = vmul.f32 2.0, %v172_v51  ;;  %v181_v60 = vmul.f32 2.0, %v173_v52 }
  0x31   :  { %v178_v61 = vmul.f32 1.1920929e-07, %v170_v53  ;;  %v179_v62 = vmul.f32 1.1920929e-07, %v171_v54  ;;  %v182_v63 = vmul.f32 2.0, %v174_v55  ;;  %v183_v0 = vmul.f32 2.0, %v175_v56 }
  0x32   :  { %v184_v2 = vmul.f32 2.0, %v176_v57  ;;  %v185_v3 = vmul.f32 2.0, %v177_v58  ;;  %v875_v4 = vadd.f32 -1.0, %v180_v59  ;;  %v877_v5 = vadd.f32 -1.0, %v181_v60 }
  0x33   :  { %v186_v6 = vmul.f32 2.0, %v178_v61  ;;  %v187_v7 = vmul.f32 2.0, %v179_v62  ;;  %v879_v8 = vadd.f32 -1.0, %v182_v63  ;;  %v881_v9 = vadd.f32 -1.0, %v183_v0 }
  0x34   :  { %v883_v10 = vadd.f32 -1.0, %v184_v2  ;;  %v885_v11 = vadd.f32 -1.0, %v185_v3  ;;  %v196_v13 = vsub.f32 1.0, %v875_v4  ;;  %v197_v14 = vsub.f32 1.0, %v877_v5 }
  0x35   :  { %v887_v12 = vadd.f32 -1.0, %v186_v6  ;;  %v198_v15 = vsub.f32 1.0, %v879_v8  ;;  %v892_v16 = vadd.f32 -1.0, %v187_v7  ;;  %v199_v17 = vsub.f32 1.0, %v881_v9 }
  0x36   :  { %v204_v18 = vadd.f32 1.0, %v875_v4  ;;  %v205_v19 = vadd.f32 1.0, %v877_v5  ;;  %v200_v20 = vsub.f32 1.0, %v883_v10  ;;  %v206_v21 = vadd.f32 1.0, %v879_v8 }
  0x37   :  { %v207_v22 = vadd.f32 1.0, %v881_v9  ;;  %v201_v23 = vsub.f32 1.0, %v885_v11  ;;  %v202_v24 = vsub.f32 1.0, %v887_v12  ;;  %v208_v25 = vadd.f32 1.0, %v883_v10 }
  0x38   :  { %v209_v26 = vadd.f32 1.0, %v885_v11  ;;  %v210_v27 = vadd.f32 1.0, %v887_v12  ;;  %v212_v28 = vmul.f32 %v204_v18, %v196_v13  ;;  %v213_v29 = vmul.f32 %v205_v19, %v197_v14 }
  0x39   :  { %v214_v30 = vmul.f32 %v206_v21, %v198_v15  ;;  %v203_v31 = vsub.f32 1.0, %v892_v16  ;;  %v211_v32 = vadd.f32 1.0, %v892_v16  ;;  %v215_v33 = vmul.f32 %v207_v22, %v199_v17 }
  0x3a   :  { %v216_v34 = vmul.f32 %v208_v25, %v200_v20  ;;  %772 = vlog2.f32 %v212_v28  ;;  %v217_v35 = vmul.f32 %v209_v26, %v201_v23  ;;  %v218_v36 = vmul.f32 %v210_v27, %v202_v24 }
  0x3b   :  { %774 = vlog2.f32 %v213_v29  ;;  %v219_v37 = vmul.f32 %v211_v32, %v203_v31 }
  0x3c   :  { %776 = vlog2.f32 %v214_v30 }
  0x3d   :  { %778 = vlog2.f32 %v215_v33 }
  0x3e   :  { %780 = vlog2.f32 %v216_v34 }
  0x3f   :  { %782 = vlog2.f32 %v217_v35 }
  0x40   :  { %784 = vlog2.f32 %v218_v36 }
  0x41   :  { %786 = vlog2.f32 %v219_v37 }
  0x47   :  { %v773_v38 = vpop.eup %772 }
  0x48   :  { %v775_v39 = vpop.eup %774  ;;  %v221_v40 = vmul.f32 0.6931472, %v773_v38 }
  0x49   :  { %v777_v41 = vpop.eup %776  ;;  %v223_v42 = vmul.f32 0.6931472, %v775_v39 }
  0x4a   :  { %v779_v43 = vpop.eup %778  ;;  %v225_v44 = vmul.f32 0.6931472, %v777_v41  ;;  %v907_v45 = vsub.f32 0.0, %v221_v40 }
  0x4b   :  { %v781_v46 = vpop.eup %780  ;;  %v227_v47 = vmul.f32 0.6931472, %v779_v43  ;;  %v909_v48 = vsub.f32 0.0, %v223_v42 }
  0x4c   :  { %v783_v49 = vpop.eup %782  ;;  %v229_v50 = vmul.f32 0.6931472, %v781_v46  ;;  %v911_v51 = vsub.f32 0.0, %v225_v44  ;;  %v914_v52 = vadd.f32 -2.5, %v907_v45  ;;  %788 = vrsqrt.f32 %v907_v45 }
  0x4d   :  { %v785_v53 = vpop.eup %784  ;;  %v231_v54 = vmul.f32 0.6931472, %v783_v49  ;;  %v916_v55 = vsub.f32 0.0, %v227_v47  ;;  %v919_v56 = vadd.f32 -2.5, %v909_v48  ;;  %vm382_vm0 = vcmp.eq.f32.partialorder %v907_v45, inf }
  0x4e   :  { %v787_v57 = vpop.eup %786  ;;  %v233_v58 = vmul.f32 0.6931472, %v785_v53  ;;  %v922_v59 = vsub.f32 0.0, %v229_v50  ;;  %v925_v60 = vadd.f32 -2.5, %v911_v51  ;;  %v252_v61 = vmul.f32 2.8102264e-08, %v914_v52 }
  0x4f   :  { %v235_v62 = vmul.f32 0.6931472, %v787_v57  ;;  %v928_v63 = vsub.f32 0.0, %v231_v54  ;;  %v931_v0 = vadd.f32 -2.5, %v916_v55  ;;  %v253_v2 = vmul.f32 2.8102264e-08, %v919_v56 }
  0x50   :  { %v934_v3 = vsub.f32 0.0, %v233_v58  ;;  %v937_v6 = vadd.f32 -2.5, %v922_v59  ;;  %v254_v7 = vmul.f32 2.8102264e-08, %v925_v60  ;;  %v260_v13 = vadd.f32 3.4327394e-07, %v252_v61 }
  0x51   :  { %v940_v14 = vsub.f32 0.0, %v235_v62  ;;  %v943_v15 = vadd.f32 -2.5, %v928_v63  ;;  %v255_v17 = vmul.f32 2.8102264e-08, %v931_v0  ;;  %v261_v18 = vadd.f32 3.4327394e-07, %v253_v2 }
  0x52   :  { %v947_v19 = vadd.f32 -2.5, %v934_v3  ;;  %v256_v20 = vmul.f32 2.8102264e-08, %v937_v6  ;;  %v262_v21 = vadd.f32 3.4327394e-07, %v254_v7  ;;  %v268_v22 = vmul.f32 %v914_v52, %v260_v13 }
  0x53   :  { %v952_v23 = vadd.f32 -2.5, %v940_v14  ;;  %v257_v24 = vmul.f32 2.8102264e-08, %v943_v15  ;;  %v263_v25 = vadd.f32 3.4327394e-07, %v255_v17  ;;  %v269_v26 = vmul.f32 %v919_v56, %v261_v18 }
  0x54   :  { %v258_v27 = vmul.f32 2.8102264e-08, %v947_v19  ;;  %v264_v28 = vadd.f32 3.4327394e-07, %v256_v20  ;;  %v270_v29 = vmul.f32 %v925_v60, %v262_v21  ;;  %v276_v30 = vadd.f32 -3.5233877e-06, %v268_v22 }
  0x55   :  { %v259_v31 = vmul.f32 2.8102264e-08, %v952_v23  ;;  %v265_v32 = vadd.f32 3.4327394e-07, %v257_v24  ;;  %v271_v33 = vmul.f32 %v931_v0, %v263_v25  ;;  %v277_v34 = vadd.f32 -3.5233877e-06, %v269_v26 }
  0x56   :  { %v266_v35 = vadd.f32 3.4327394e-07, %v258_v27  ;;  %v272_v36 = vmul.f32 %v937_v6, %v264_v28  ;;  %v278_v37 = vadd.f32 -3.5233877e-06, %v270_v29  ;;  %v284_v38 = vmul.f32 %v914_v52, %v276_v30 }
  0x57   :  { %v267_v39 = vadd.f32 3.4327394e-07, %v259_v31  ;;  %v273_v40 = vmul.f32 %v943_v15, %v265_v32  ;;  %v279_v41 = vadd.f32 -3.5233877e-06, %v271_v33  ;;  %v285_v42 = vmul.f32 %v919_v56, %v277_v34 }
  0x58   :  { %v274_v43 = vmul.f32 %v947_v19, %v266_v35  ;;  %v280_v44 = vadd.f32 -3.5233877e-06, %v272_v36  ;;  %v286_v46 = vmul.f32 %v925_v60, %v278_v37  ;;  %v292_v47 = vadd.f32 -4.3915065e-06, %v284_v38 }
  0x59   :  { %v275_v49 = vmul.f32 %v952_v23, %v267_v39  ;;  %v281_v50 = vadd.f32 -3.5233877e-06, %v273_v40  ;;  %v287_v53 = vmul.f32 %v931_v0, %v279_v41  ;;  %v293_v54 = vadd.f32 -4.3915065e-06, %v285_v42  ;;  %v968_v57 = vpop.eup %788 }
  0x5a   :  { %v282_v58 = vadd.f32 -3.5233877e-06, %v274_v43  ;;  %v288_v61 = vmul.f32 %v937_v6, %v280_v44  ;;  %v294_v62 = vadd.f32 -4.3915065e-06, %v286_v46  ;;  %v300_v2 = vmul.f32 %v914_v52, %v292_v47 }
  0x5b   :  { %v283_v7 = vadd.f32 -3.5233877e-06, %v275_v49  ;;  %v289_v13 = vmul.f32 %v943_v15, %v281_v50  ;;  %v295_v17 = vadd.f32 -4.3915065e-06, %v287_v53  ;;  %v301_v18 = vmul.f32 %v919_v56, %v293_v54 }
  0x5c   :  { %v290_v20 = vmul.f32 %v947_v19, %v282_v58  ;;  %v296_v21 = vadd.f32 -4.3915065e-06, %v288_v61  ;;  %v302_v22 = vmul.f32 %v925_v60, %v294_v62  ;;  %v308_v24 = vadd.f32 0.00021858087, %v300_v2 }
  0x5d   :  { %v291_v25 = vmul.f32 %v952_v23, %v283_v7  ;;  %v297_v26 = vadd.f32 -4.3915065e-06, %v289_v13  ;;  %v303_v27 = vmul.f32 %v931_v0, %v295_v17  ;;  %v309_v28 = vadd.f32 0.00021858087, %v301_v18 }
  0x5e   :  { %v298_v29 = vadd.f32 -4.3915065e-06, %v290_v20  ;;  %v304_v30 = vmul.f32 %v937_v6, %v296_v21  ;;  %v310_v31 = vadd.f32 0.00021858087, %v302_v22  ;;  %v316_v32 = vmul.f32 %v914_v52, %v308_v24 }
  0x5f   :  { %v299_v33 = vadd.f32 -4.3915065e-06, %v291_v25  ;;  %v305_v34 = vmul.f32 %v943_v15, %v297_v26  ;;  %v311_v35 = vadd.f32 0.00021858087, %v303_v27  ;;  %v317_v36 = vmul.f32 %v919_v56, %v309_v28 }
  0x60   :  { %v306_v37 = vmul.f32 %v947_v19, %v298_v29  ;;  %v312_v38 = vadd.f32 0.00021858087, %v304_v30  ;;  %v318_v39 = vmul.f32 %v925_v60, %v310_v31  ;;  %v324_v40 = vadd.f32 -0.001253725, %v316_v32 }
  0x61   :  { %v307_v41 = vmul.f32 %v952_v23, %v299_v33  ;;  %v313_v42 = vadd.f32 0.00021858087, %v305_v34  ;;  %v319_v43 = vmul.f32 %v931_v0, %v311_v35  ;;  %v325_v44 = vadd.f32 -0.001253725, %v317_v36  ;;  %v998_v36 = vld [vmem:[#allocation4] sm:$0xff] }
  0x62   :  { %v314_v46 = vadd.f32 0.00021858087, %v306_v37  ;;  %v320_v47 = vmul.f32 %v937_v6, %v312_v38  ;;  %v326_v49 = vadd.f32 -0.001253725, %v318_v39  ;;  %v332_v62 = vmul.f32 %v914_v52, %v324_v40 }
  0x63   :  { %v315_v50 = vadd.f32 0.00021858087, %v307_v41  ;;  %v321_v53 = vmul.f32 %v943_v15, %v313_v42  ;;  %v327_v54 = vadd.f32 -0.001253725, %v319_v43  ;;  %v333_v2 = vmul.f32 %v919_v56, %v325_v44 }
  0x64   :  { %v322_v58 = vmul.f32 %v947_v19, %v314_v46  ;;  %v328_v61 = vadd.f32 -0.001253725, %v320_v47  ;;  %v334_v17 = vmul.f32 %v925_v60, %v326_v49  ;;  %v340_v26 = vadd.f32 -0.0041776816, %v332_v62  ;;  %v1006_v46 = vld [vmem:[#allocation4 + $0x8] sm:$0xff] }
  0x65   :  { %v323_v7 = vmul.f32 %v952_v23, %v315_v50  ;;  %v329_v13 = vadd.f32 -0.001253725, %v321_v53  ;;  %v335_v18 = vmul.f32 %v931_v0, %v327_v54  ;;  %v849_v27 = vmov 1983009808  }
  0x66   :  { %v330_v20 = vadd.f32 -0.001253725, %v322_v58  ;;  %v336_v21 = vmul.f32 %v937_v6, %v328_v61  ;;  %v608_v28 = vunpack.c.l.s4 %v849_v27  ;;  %v341_v30 = vadd.f32 -0.0041776816, %v333_v2 }
  0x67   :  { %v331_v22 = vadd.f32 -0.001253725, %v323_v7  ;;  %v337_v24 = vmul.f32 %v943_v15, %v329_v13  ;;  %v342_v31 = vadd.f32 -0.0041776816, %v334_v17  ;;  %v343_v32 = vadd.f32 -0.0041776816, %v335_v18 }
  0x68   :  { %v338_v25 = vmul.f32 %v947_v19, %v330_v20  ;;  %v344_v33 = vadd.f32 -0.0041776816, %v336_v21  ;;  %v348_v38 = vmul.f32 %v914_v52, %v340_v26  ;;  %v609_v39 = vunpack.c.0.s8 %v608_v28 }
  0x69   :  { %v339_v29 = vmul.f32 %v952_v23, %v331_v22  ;;  %v345_v34 = vadd.f32 -0.0041776816, %v337_v24  ;;  %v349_v40 = vmul.f32 %v919_v56, %v341_v30  ;;  %v350_v41 = vmul.f32 %v925_v60, %v342_v31 }
  0x6a   :  { %v346_v35 = vadd.f32 -0.0041776816, %v338_v25  ;;  %v351_v42 = vmul.f32 %v931_v0, %v343_v32  ;;  %v352_v43 = vmul.f32 %v937_v6, %v344_v33  ;;  %v381_v49 = vmul.f32 %v968_v57, %v907_v45 }
  0x6b   :  { %v347_v37 = vadd.f32 -0.0041776816, %v339_v29  ;;  %v353_v44 = vmul.f32 %v943_v15, %v345_v34  ;;  %v606_v50 = vcombine.high %v998_v36, %v998_v36  ;;  %v356_v54 = vadd.f32 0.24664073, %v348_v38 }
  0x6c   :  { %v354_v47 = vmul.f32 %v947_v19, %v346_v35  ;;  %v1016_v58 = vsub.s32 %v609_v39, %v872_v1  ;;  %v357_v61 = vadd.f32 0.24664073, %v349_v40  ;;  %v358_v62 = vadd.f32 0.24664073, %v350_v41 }
  0x6d   :  { %v355_v53 = vmul.f32 %v952_v23, %v347_v37  ;;  %v359_v2 = vadd.f32 0.24664073, %v351_v42  ;;  %790 = vrsqrt.f32 %v909_v48  ;;  %v360_v7 = vadd.f32 0.24664073, %v352_v43 }
  0x6e   :  { %v361_v13 = vadd.f32 0.24664073, %v353_v44  ;;  %v385_v57 = vand.u32 2147483648, %v907_v45  ;;  %v623_v17 = vcombine.high %v1006_v46, %v1006_v46  ;;  %v362_v18 = vadd.f32 0.24664073, %v354_v47 }
  0x6f   :  { %v383_v20 = vsel %vm382_vm0, %v907_v45, %v381_v49  ;;  %vm384_vm1 = vcmp.eq.f32.partialorder %v907_v45, 0.0  ;;  %792 = vrsqrt.f32 %v911_v51  ;;  %v363_v1 = vadd.f32 0.24664073, %v355_v53 }
  0x70   :  { %v364_v21 = vmul.f32 %v914_v52, %v356_v54  ;;  %794 = vrsqrt.f32 %v916_v55  ;;  %v1029_v22 = vrot.slane %v998_v36, %v1016_v58  ;;  %v365_v24 = vmul.f32 %v919_v56, %v357_v61 }
  0x71   :  { %v366_v25 = vmul.f32 %v925_v60, %v358_v62  ;;  %v367_v26 = vmul.f32 %v931_v0, %v359_v2  ;;  %796 = vrsqrt.f32 %v922_v59  ;;  %v368_v27 = vmul.f32 %v937_v6, %v360_v7 }
  0x72   :  { %v369_v28 = vmul.f32 %v943_v15, %v361_v13  ;;  %v386_v29 = vsel %vm384_vm1, %v385_v57, %v383_v20  ;;  %798 = vrsqrt.f32 %v928_v63  ;;  %v370_v52 = vmul.f32 %v947_v19, %v362_v18 }
  0x73   :  { %800 = vrsqrt.f32 %v934_v3  ;;  %v1041_v30 = vrot.slane %v606_v50, %v1016_v58  ;;  %v371_v56 = vmul.f32 %v952_v23, %v363_v1  ;;  %v1044_v60 = vadd.f32 1.5014094, %v364_v21 }
  0x74   :  { %802 = vrsqrt.f32 %v940_v14  ;;  %v1049_v0 = vrot.slane %v1006_v46, %v1016_v58  ;;  %v1051_v6 = vadd.f32 1.5014094, %v365_v24  ;;  %v1053_v15 = vadd.f32 1.5014094, %v366_v25 }
  0x75   :  { %v1055_v19 = vadd.f32 -3.0, %v386_v29  ;;  %v1058_v31 = vrot.slane %v623_v17, %v1016_v58  ;;  %v1060_v32 = vadd.f32 1.5014094, %v367_v26  ;;  %v1062_v23 = vadd.f32 1.5014094, %v368_v27 }
  0x76   :  { %v1064_v33 = vadd.f32 1.5014094, %v369_v28  ;;  %v621_v34 = vcombine.high %v1029_v22, %v1029_v22  ;;  %v1068_v35 = vadd.f32 1.5014094, %v370_v52  ;;  %vm389_vm2 = vcmp.eq.f32.partialorder %v909_v48, inf }
  0x77   :  { %v444_v37 = vmul.f32 -0.00020021426, %v1055_v19  ;;  %v622_v38 = vcombine.high %v1041_v30, %v1041_v30  ;;  %v1074_v39 = vadd.f32 1.5014094, %v371_v56  ;;  %vm391_vm3 = vcmp.eq.f32.partialorder %v909_v48, 0.0 }
  0x78   :  { %v392_v40 = vand.u32 2147483648, %v909_v48  ;;  %vm396_vm4 = vcmp.eq.f32.partialorder %v911_v51, inf  ;;  %vm398_vm5 = vcmp.eq.f32.partialorder %v911_v51, 0.0  ;;  %v399_v41 = vand.u32 2147483648, %v911_v51 }
  0x79   :  { %vm403_vm6 = vcmp.eq.f32.partialorder %v916_v55, inf  ;;  %v452_v42 = vadd.f32 0.00010095056, %v444_v37  ;;  %vm405_vm7 = vcmp.eq.f32.partialorder %v916_v55, 0.0  ;;  %v406_v44 = vand.u32 2147483648, %v916_v55 }
  0x7a   :  { %v791_v43 = vpop.eup %790  ;;  %vm410_vm8 = vcmp.eq.f32.partialorder %v922_v59, inf  ;;  %vm412_vm9 = vcmp.eq.f32.partialorder %v922_v59, 0.0  ;;  %v413_v49 = vand.u32 2147483648, %v922_v59  ;;  %vm417_vm10 = vcmp.eq.f32.partialorder %v928_v63, inf }
  0x7b   :  { %v388_v47 = vmul.f32 %v791_v43, %v909_v48  ;;  %v460_v50 = vmul.f32 %v1055_v19, %v452_v42  ;;  %vm419_vm11 = vcmp.eq.f32.partialorder %v928_v63, 0.0  ;;  %v420_v54 = vand.u32 2147483648, %v928_v63 }
  0x7c   :  { %v793_v53 = vpop.eup %792  ;;  %vm424_vm12 = vcmp.eq.f32.partialorder %v934_v3, inf  ;;  %vm426_vm13 = vcmp.eq.f32.partialorder %v934_v3, 0.0  ;;  %v427_v7 = vand.u32 2147483648, %v934_v3  ;;  %vm431_vm14 = vcmp.eq.f32.partialorder %v940_v14, inf }
  0x7d   :  { %v795_v61 = vpop.eup %794  ;;  %v390_v62 = vsel %vm389_vm2, %v909_v48, %v388_v47  ;;  %v395_v2 = vmul.f32 %v793_v53, %v911_v51  ;;  %v468_v13 = vadd.f32 0.0013493432, %v460_v50  ;;  %vm433_vm15 = vcmp.eq.f32.partialorder %v940_v14, 0.0 }
  0x7e   :  { %v797_v57 = vpop.eup %796  ;;  %v393_v17 = vsel %vm391_vm3, %v392_v40, %v390_v62  ;;  %v402_v18 = vmul.f32 %v795_v61, %v916_v55  ;;  %v434_v24 = vand.u32 2147483648, %v940_v14  ;;  %vm572_vm0 = vcmp.lt.f32.partialorder %v907_v45, 5.0 }
  0x7f   :  { %v799_v20 = vpop.eup %798  ;;  %v397_v1 = vsel %vm396_vm4, %v911_v51, %v395_v2  ;;  %v409_v21 = vmul.f32 %v797_v57, %v922_v59  ;;  %v1109_v25 = vadd.f32 -3.0, %v393_v17  ;;  %v476_v52 = vmul.f32 %v1055_v19, %v468_v13 }
  0x80   :  { %v801_v26 = vpop.eup %800  ;;  %v400_v27 = vsel %vm398_vm5, %v399_v41, %v397_v1  ;;  %v404_v28 = vsel %vm403_vm6, %v916_v55, %v402_v18  ;;  %v416_v29 = vmul.f32 %v799_v20, %v928_v63  ;;  %vm573_vm1 = vcmp.lt.f32.partialorder %v909_v48, 5.0 }
  0x81   :  { %v803_v56 = vpop.eup %802  ;;  %v407_v37 = vsel %vm405_vm7, %v406_v44, %v404_v28  ;;  %v411_v40 = vsel %vm410_vm8, %v922_v59, %v409_v21  ;;  %v423_v42 = vmul.f32 %v801_v26, %v934_v3  ;;  %v1124_v43 = vadd.f32 -3.0, %v400_v27 }
  0x82   :  { %v414_v41 = vsel %vm412_vm9, %v413_v49, %v411_v40  ;;  %v418_v47 = vsel %vm417_vm10, %v928_v63, %v416_v29  ;;  %v430_v50 = vmul.f32 %v803_v56, %v940_v14  ;;  %v1132_v53 = vadd.f32 -3.0, %v407_v37 }
  0x83   :  { %v421_v44 = vsel %vm419_vm11, %v420_v54, %v418_v47  ;;  %v425_v61 = vsel %vm424_vm12, %v934_v3, %v423_v42  ;;  %v1139_v62 = vadd.f32 -3.0, %v414_v41  ;;  %v445_v2 = vmul.f32 -0.00020021426, %v1109_v25 }
  0x84   :  { %v428_v49 = vsel %vm426_vm13, %v427_v7, %v425_v61  ;;  %v432_v13 = vsel %vm431_vm14, %v940_v14, %v430_v50  ;;  %v1147_v57 = vadd.f32 -3.0, %v421_v44  ;;  %v446_v17 = vmul.f32 -0.00020021426, %v1124_v43 }
  0x85   :  { %v435_v54 = vsel %vm433_vm15, %v434_v24, %v432_v13  ;;  %v1152_v18 = vadd.f32 -3.0, %v428_v49  ;;  %v447_v20 = vmul.f32 -0.00020021426, %v1132_v53  ;;  %v448_v1 = vmul.f32 -0.00020021426, %v1139_v62 }
  0x86   :  { %v1156_v21 = vadd.f32 -3.0, %v435_v54  ;;  %v449_v7 = vmul.f32 -0.00020021426, %v1147_v57  ;;  %v453_v26 = vadd.f32 0.00010095056, %v445_v2  ;;  %v638_v27 = vcombine.high %v1049_v0, %v1049_v0 }
  0x87   :  { %v450_v28 = vmul.f32 -0.00020021426, %v1152_v18  ;;  %v454_v29 = vadd.f32 0.00010095056, %v446_v17  ;;  %v455_v56 = vadd.f32 0.00010095056, %v447_v20 }
  0x88   :  { %v451_v37 = vmul.f32 -0.00020021426, %v1156_v21  ;;  %v456_v40 = vadd.f32 0.00010095056, %v448_v1  ;;  %v457_v42 = vadd.f32 0.00010095056, %v449_v7  ;;  %v461_v41 = vmul.f32 %v1109_v25, %v453_v26 }
  0x89   :  { %v458_v47 = vadd.f32 0.00010095056, %v450_v28  ;;  %v462_v50 = vmul.f32 %v1124_v43, %v454_v29  ;;  %v463_v44 = vmul.f32 %v1132_v53, %v455_v56  ;;  %v484_v61 = vadd.f32 -0.0036734284, %v476_v52 }
  0x8a   :  { %v459_v2 = vadd.f32 0.00010095056, %v451_v37  ;;  %v464_v49 = vmul.f32 %v1139_v62, %v456_v40  ;;  %v465_v13 = vmul.f32 %v1147_v57, %v457_v42  ;;  %v469_v17 = vadd.f32 0.0013493432, %v461_v41 }
  0x8b   :  { %v466_v54 = vmul.f32 %v1152_v18, %v458_v47  ;;  %v470_v20 = vadd.f32 0.0013493432, %v462_v50  ;;  %v471_v24 = vadd.f32 0.0013493432, %v463_v44  ;;  %v492_v1 = vmul.f32 %v1055_v19, %v484_v61 }
  0x8c   :  { %v467_v7 = vmul.f32 %v1156_v21, %v459_v2  ;;  %v472_v26 = vadd.f32 0.0013493432, %v464_v49  ;;  %v473_v28 = vadd.f32 0.0013493432, %v465_v13  ;;  %v477_v29 = vmul.f32 %v1109_v25, %v469_v17 }
  0x8d   :  { %v474_v56 = vadd.f32 0.0013493432, %v466_v54  ;;  %v478_v52 = vmul.f32 %v1124_v43, %v470_v20  ;;  %v479_v37 = vmul.f32 %v1132_v53, %v471_v24  ;;  %v500_v40 = vadd.f32 0.0057395077, %v492_v1 }
  0x8e   :  { %v475_v42 = vadd.f32 0.0013493432, %v467_v7  ;;  %v480_v41 = vmul.f32 %v1139_v62, %v472_v26  ;;  %v481_v47 = vmul.f32 %v1147_v57, %v473_v28  ;;  %v485_v50 = vadd.f32 -0.0036734284, %v477_v29 }
  0x8f   :  { %v482_v44 = vmul.f32 %v1152_v18, %v474_v56  ;;  %v486_v61 = vadd.f32 -0.0036734284, %v478_v52  ;;  %v487_v2 = vadd.f32 -0.0036734284, %v479_v37  ;;  %v508_v49 = vmul.f32 %v1055_v19, %v500_v40 }
  0x90   :  { %v483_v13 = vmul.f32 %v1156_v21, %v475_v42  ;;  %v488_v17 = vadd.f32 -0.0036734284, %v480_v41  ;;  %v489_v54 = vadd.f32 -0.0036734284, %v481_v47  ;;  %v493_v20 = vmul.f32 %v1109_v25, %v485_v50 }
  0x91   :  { %v490_v24 = vadd.f32 -0.0036734284, %v482_v44  ;;  %v494_v1 = vmul.f32 %v1124_v43, %v486_v61  ;;  %v495_v7 = vmul.f32 %v1132_v53, %v487_v2  ;;  %v516_v26 = vadd.f32 -0.0076224613, %v508_v49 }
  0x92   :  { %v491_v28 = vadd.f32 -0.0036734284, %v483_v13  ;;  %v496_v29 = vmul.f32 %v1139_v62, %v488_v17  ;;  %v497_v56 = vmul.f32 %v1147_v57, %v489_v54  ;;  %v501_v52 = vadd.f32 0.0057395077, %v493_v20 }
  0x93   :  { %v498_v37 = vmul.f32 %v1152_v18, %v490_v24  ;;  %v502_v40 = vadd.f32 0.0057395077, %v494_v1  ;;  %v503_v42 = vadd.f32 0.0057395077, %v495_v7  ;;  %v524_v41 = vmul.f32 %v1055_v19, %v516_v26 }
  0x94   :  { %v499_v47 = vmul.f32 %v1156_v21, %v491_v28  ;;  %v504_v50 = vadd.f32 0.0057395077, %v496_v29  ;;  %v505_v44 = vadd.f32 0.0057395077, %v497_v56  ;;  %v509_v61 = vmul.f32 %v1109_v25, %v501_v52 }
  0x95   :  { %v506_v2 = vadd.f32 0.0057395077, %v498_v37  ;;  %v510_v49 = vmul.f32 %v1124_v43, %v502_v40  ;;  %v511_v13 = vmul.f32 %v1132_v53, %v503_v42  ;;  %v532_v17 = vadd.f32 0.0094388705, %v524_v41 }
  0x96   :  { %v507_v54 = vadd.f32 0.0057395077, %v499_v47  ;;  %v512_v20 = vmul.f32 %v1139_v62, %v504_v50  ;;  %v513_v24 = vmul.f32 %v1147_v57, %v505_v44  ;;  %v517_v1 = vadd.f32 -0.0076224613, %v509_v61 }
  0x97   :  { %v514_v7 = vmul.f32 %v1152_v18, %v506_v2  ;;  %v518_v26 = vadd.f32 -0.0076224613, %v510_v49  ;;  %v519_v28 = vadd.f32 -0.0076224613, %v511_v13  ;;  %v540_v29 = vmul.f32 %v1055_v19, %v532_v17 }
  0x98   :  { %v515_v56 = vmul.f32 %v1156_v21, %v507_v54  ;;  %v520_v52 = vadd.f32 -0.0076224613, %v512_v20  ;;  %v521_v37 = vadd.f32 -0.0076224613, %v513_v24  ;;  %v525_v40 = vmul.f32 %v1109_v25, %v517_v1 }
  0x99   :  { %v522_v42 = vadd.f32 -0.0076224613, %v514_v7  ;;  %v526_v41 = vmul.f32 %v1124_v43, %v518_v26  ;;  %v527_v47 = vmul.f32 %v1132_v53, %v519_v28  ;;  %v548_v50 = vadd.f32 1.001674, %v540_v29 }
  0x9a   :  { %v523_v44 = vadd.f32 -0.0076224613, %v515_v56  ;;  %v528_v61 = vmul.f32 %v1139_v62, %v520_v52  ;;  %v529_v2 = vmul.f32 %v1147_v57, %v521_v37  ;;  %v533_v49 = vadd.f32 0.0094388705, %v525_v40 }
  0x9b   :  { %vm574_vm2 = vcmp.lt.f32.partialorder %v911_v51, 5.0  ;;  %vm575_vm3 = vcmp.lt.f32.partialorder %v916_v55, 5.0  ;;  %v530_v13 = vmul.f32 %v1152_v18, %v522_v42  ;;  %v534_v17 = vadd.f32 0.0094388705, %v526_v41 }
  0x9c   :  { %v535_v54 = vadd.f32 0.0094388705, %v527_v47  ;;  %v556_v20 = vmul.f32 %v1055_v19, %v548_v50  ;;  %vm576_vm4 = vcmp.lt.f32.partialorder %v922_v59, 5.0  ;;  %vm577_vm5 = vcmp.lt.f32.partialorder %v928_v63, 5.0 }
  0x9d   :  { %v531_v24 = vmul.f32 %v1156_v21, %v523_v44  ;;  %v536_v1 = vadd.f32 0.0094388705, %v528_v61  ;;  %v537_v7 = vadd.f32 0.0094388705, %v529_v2  ;;  %v541_v26 = vmul.f32 %v1109_v25, %v533_v49 }
  0x9e   :  { %vm578_vm6 = vcmp.lt.f32.partialorder %v934_v3, 5.0  ;;  %v538_v28 = vadd.f32 0.0094388705, %v530_v13  ;;  %v542_v29 = vmul.f32 %v1124_v43, %v534_v17  ;;  %v543_v56 = vmul.f32 %v1132_v53, %v535_v54 }
  0x9f   :  { %v564_v52 = vadd.f32 2.8329768, %v556_v20  ;;  %vm579_vm7 = vcmp.lt.f32.partialorder %v940_v14, 5.0  ;;  %v539_v19 = vadd.f32 0.0094388705, %v531_v24  ;;  %v544_v37 = vmul.f32 %v1139_v62, %v536_v1 }
  0xa0   :  { %v545_v40 = vmul.f32 %v1147_v57, %v537_v7  ;;  %v549_v42 = vadd.f32 1.001674, %v541_v26  ;;  %v546_v41 = vmul.f32 %v1152_v18, %v538_v28  ;;  %v550_v47 = vadd.f32 1.001674, %v542_v29 }
  0xa1   :  { %v551_v50 = vadd.f32 1.001674, %v543_v56  ;;  %v580_v44 = vsel %vm572_vm0, %v1044_v60, %v564_v52  ;;  %v547_v61 = vmul.f32 %v1156_v21, %v539_v19  ;;  %v552_v2 = vadd.f32 1.001674, %v544_v37 }
  0xa2   :  { %v553_v49 = vadd.f32 1.001674, %v545_v40  ;;  %v557_v13 = vmul.f32 %v1109_v25, %v549_v42  ;;  %v554_v17 = vadd.f32 1.001674, %v546_v41  ;;  %v558_v54 = vmul.f32 %v1124_v43, %v550_v47 }
  0xa3   :  { %v559_v20 = vmul.f32 %v1132_v53, %v551_v50  ;;  %v588_v24 = vmul.f32 %v875_v4, %v580_v44  ;;  %v555_v1 = vadd.f32 1.001674, %v547_v61  ;;  %v560_v7 = vmul.f32 %v1139_v62, %v552_v2 }
  0xa4   :  { %v561_v26 = vmul.f32 %v1147_v57, %v553_v49  ;;  %v565_v45 = vadd.f32 2.8329768, %v557_v13  ;;  %v562_v60 = vmul.f32 %v1152_v18, %v554_v17  ;;  %v566_v28 = vadd.f32 2.8329768, %v558_v54 }
  0xa5   :  { %v567_v29 = vadd.f32 2.8329768, %v559_v20  ;;  %v596_v56 = vmul.f32 1.4142135, %v588_v24  ;;  %v563_v25 = vmul.f32 %v1156_v21, %v555_v1  ;;  %v568_v52 = vadd.f32 2.8329768, %v560_v7 }
  0xa6   :  { %v569_v19 = vadd.f32 2.8329768, %v561_v26  ;;  %v581_v43 = vsel %vm573_vm1, %v1051_v6, %v565_v45  ;;  %v570_v4 = vadd.f32 2.8329768, %v562_v60  ;;  %v582_v53 = vsel %vm574_vm2, %v1053_v15, %v566_v28 }
  0xa7   :  { %v583_v62 = vsel %vm575_vm3, %v1060_v32, %v567_v29  ;;  %v589_v57 = vmul.f32 %v877_v5, %v581_v43  ;;  %v571_v18 = vadd.f32 2.8329768, %v563_v25  ;;  %v584_v21 = vsel %vm576_vm4, %v1062_v23, %v568_v52 }
  0xa8   :  { %v585_v48 = vsel %vm577_vm5, %v1064_v33, %v569_v19  ;;  %v590_v6 = vmul.f32 %v879_v8, %v582_v53  ;;  %v586_v51 = vsel %vm578_vm6, %v1068_v35, %v570_v4  ;;  %v591_v55 = vmul.f32 %v881_v9, %v583_v62 }
  0xa9   :  { %v592_v15 = vmul.f32 %v883_v10, %v584_v21  ;;  %v593_v5 = vmul.f32 %v885_v11, %v585_v48  ;;  %v587_v59 = vsel %vm579_vm7, %v1074_v39, %v571_v18  ;;  %v594_v32 = vmul.f32 %v887_v12, %v586_v51 }
  0xaa   :  { %v597_v63 = vmul.f32 1.4142135, %v589_v57  ;;  %v598_v23 = vmul.f32 1.4142135, %v590_v6  ;;  %v595_v8 = vmul.f32 %v892_v16, %v587_v59  ;;  %v599_v33 = vmul.f32 1.4142135, %v591_v55 }
  0xab   :  { %v600_v37 = vmul.f32 1.4142135, %v592_v15  ;;  %v601_v3 = vmul.f32 1.4142135, %v593_v5  ;;  %v602_v35 = vmul.f32 1.4142135, %v594_v32  ;;  %v648_v9 = vmul.f32 %v1029_v22, %v596_v56 }
  0xac   :  { %v649_v10 = vmul.f32 %v621_v34, %v597_v63  ;;  %v650_v11 = vmul.f32 %v1041_v30, %v598_v23  ;;  %v603_v14 = vmul.f32 1.4142135, %v595_v8  ;;  %v651_v12 = vmul.f32 %v622_v38, %v599_v33 }
  0xad   :  { %v652_v39 = vmul.f32 %v1049_v0, %v600_v37  ;;  %v653_v16 = vmul.f32 %v638_v27, %v601_v3  ;;  %v654_v40 = vmul.f32 %v1058_v31, %v602_v35  ;;  %v1287_v22 = vcombine.high %v1058_v31, %v1058_v31 }
  0xae   :  { %v664_v42 = vcombine.low %v648_v9, %v649_v10  ;;  %v665_v41 = vcombine.low %v650_v11, %v651_v12 }
  0xaf   :  { %v655_v34 = vmul.f32 %v1287_v22, %v603_v14  ;;  %v681_v47 = vcombine.low %v652_v39, %v653_v16 }
  0xb0   :  { %v672_v50 = vrot.slane %v664_v42, %v1016_v58  ;;  %v679_v30 = vrot.slane %v665_v41, %v1016_v58 }
  0xb1   :  { %v682_v38 = vcombine.low %v654_v40, %v655_v34  ;;  %v689_v44 = vrot.slane %v681_v47, %v1016_v58 }
  0xb2   :  { %v680_v61 = vcombine.low %v672_v50, %v679_v30 }
  0xb3   :  { %v696_v0 = vrot.slane %v682_v38, %v1016_v58 }
  0xb4   :  { %v700_v2 = vadd.f32 %v680_v61, %v998_v36 }
  0xb5   :  { %v697_v27 = vcombine.low %v689_v44, %v696_v0 }
  0xb6   :  { %702 = vst [vmem:[#allocation7] sm:$0xff] %v700_v2 }
  0xb7   :  { %v701_v31 = vadd.f32 %v697_v27, %v1006_v46 }
  0xb9   :  { %703 = vst [vmem:[#allocation7 + $0x8] sm:$0xff] %v701_v31 }
  0xba   :  { %835 = shalt.err (!%p832_p9)
}
  0xbb   :  { %713 = dma.vmem_to_hbm [thread:$0]  %s711_s1, 256, %s1286_s2, [#allocation6]  }
  0xbc   :  { %846 = dma.done.wait [#allocation6], 256  }
  0xbd   :  { %847 = vsyncadd [#allocation6], 4294967040 }
  0xbe   :  { %717 = vsyncpa [#allocation5], 1 }
  0xbf   :  { %718 = vsyncpa [#allocation6], 1 }

</bundles_post_ra>
